<compile_context>
chip_gen: v5e
topology: v5e:2x2
jax: 0.10.0
libtpu: 0.0.40
codegen_flags: <defaults>
</compile_context>

<pallas_src>
import jax
import jax.numpy as jnp
from jax.experimental import pallas as pl
from jax.experimental.pallas import tpu as pltpu


def _round_up(v: int, m: int) -> int:
    return (v + m - 1) // m * m


def _mlp_kernel(x_ref, w1_ref, b1_ref, w2_ref, b2_ref, o_ref):
    # fc1 on the MXU: (TB, K) bf16 @ (K, Hp) bf16 -> f32 accumulator.
    h = jnp.dot(x_ref[...], w1_ref[...], preferred_element_type=jnp.float32)
    # Bias + ReLU in f32 on the accumulator (safe on v5e: no bf16 VPU path).
    h = jnp.maximum(h + b1_ref[...], 0.0)
    # fc2: bf16 MXU operands, f32 accumulation; store bf16 (halves writeback).
    out = jnp.dot(h.astype(jnp.bfloat16), w2_ref[...],
                  preferred_element_type=jnp.float32)
    o_ref[...] = (out + b2_ref[...]).astype(o_ref.dtype)


def prepare_mlp_params(w1, b1, w2, b2):
    """One-time weight preparation (pad to lane-dense dims + cast to bf16).

    Call this at weight-load time; the per-call forward closes over the result
    so no per-call weight copies hit HBM.
      w1: (784, H)  fc1 weight (already (in, out))
      b1: (H,) or (1, H)
      w2: (H, 10)   fc2 weight
      b2: (10,) or (1, 10)
    """
    K, H = w1.shape
    N = w2.shape[1]
    Hp = _round_up(H, 128)
    Np = _round_up(N, 128)
    w1p = jnp.zeros((K, Hp), jnp.bfloat16).at[:, :H].set(w1.astype(jnp.bfloat16))
    b1p = jnp.zeros((1, Hp), jnp.float32).at[:, :H].set(
        b1.reshape(1, H).astype(jnp.float32))
    w2p = jnp.zeros((Hp, Np), jnp.bfloat16).at[:H, :N].set(w2.astype(jnp.bfloat16))
    b2p = jnp.zeros((1, Np), jnp.float32).at[:, :N].set(
        b2.reshape(1, N).astype(jnp.float32))
    return {"w1": w1p, "b1": b1p, "w2": w2p, "b2": b2p, "K": K, "H": H, "N": N}


def renate_mlp_forward(x, params, task_id=None, *,
                       max_batch_tile=1024, min_pallas_batch=128):
    """Forward pass of the MyMNISTMLP RenateModule example.

    x      : (B, 784) float  -- flattened MNIST images
    params : output of prepare_mlp_params
    returns logits (B, 10) bfloat16
    """
    # TODO(synk): task_id is part of RenateModule's CL API; unused here.
    del task_id
    w1p, b1p, w2p, b2p = params["w1"], params["b1"], params["w2"], params["b2"]
    K, N = params["K"], params["N"]
    Hp, Np = w1p.shape[1], w2p.shape[1]
    B = x.shape[0]
    assert x.shape[1] == K

    xb = x.astype(jnp.bfloat16)

    # Tiny batches: pallas_call fixed cost dominates -> plain XLA, same numerics.
    if B < min_pallas_batch:
        h = jnp.maximum(jnp.dot(xb, w1p, preferred_element_type=jnp.float32)
                        + b1p, 0.0)
        out = jnp.dot(h.astype(jnp.bfloat16), w2p,
                      preferred_element_type=jnp.float32) + b2p
        return out[:, :N].astype(jnp.bfloat16)

    # Pad the batch only to a multiple of 8 (sublane alignment); the ragged
    # last grid tile is handled by Pallas and padded rows are sliced off.
    Bp = _round_up(B, 8)
    if Bp != B:
        xb = jnp.pad(xb, ((0, Bp - B), (0, 0)))

    # Batch tile: at least 2 tiles whenever Bp >= 16 so v7x megacore gets both
    # TensorCores busy; capped by a VMEM budget (matters only if num_hidden is
    # scaled far beyond the MNIST example, esp. on v7x's 64 MiB VMEM).
    TB = min(max_batch_tile, _round_up(pl.cdiv(Bp, 2), 8)) if Bp >= 16 else Bp

    def _vmem_estimate(tb):
        x_b = 2 * tb * K * 2                         # double-buffered bf16 x tile
        o_b = 2 * tb * Np * 2                        # double-buffered bf16 out tile
        w_b = 2 * (K * Hp * 2 + Hp * 4 + Hp * Np * 2 + Np * 4)   # resident weights
        h_b = tb * Hp * 4 + tb * Hp * 2 + tb * Np * 4            # kernel temporaries
        return x_b + o_b + w_b + h_b

    vmem_budget = 40 * 1024 * 1024
    while TB > 8 and _vmem_estimate(TB) > vmem_budget:
        TB = max(8, _round_up(TB // 2, 8))

    grid = (pl.cdiv(Bp, TB),)

    flops = 2 * B * (K * Hp + Hp * Np)
    bytes_accessed = (Bp * K * 2                      # bf16 x
                      + w1p.size * 2 + w2p.size * 2   # bf16 weights
                      + b1p.size * 4 + b2p.size * 4   # f32 biases
                      + Bp * Np * 2)                  # bf16 output slab

    out = pl.pallas_call(
        _mlp_kernel,
        out_shape=jax.ShapeDtypeStruct((Bp, Np), jnp.bfloat16),
        grid=grid,
        in_specs=[
            pl.BlockSpec((TB, K), lambda i: (i, 0)),    # x tile, streamed
            pl.BlockSpec((K, Hp), lambda i: (0, 0)),    # w1 VMEM-resident
            pl.BlockSpec((1, Hp), lambda i: (0, 0)),    # b1 resident
            pl.BlockSpec((Hp, Np), lambda i: (0, 0)),   # w2 resident
            pl.BlockSpec((1, Np), lambda i: (0, 0)),    # b2 resident
        ],
        out_specs=pl.BlockSpec((TB, Np), lambda i: (i, 0)),
        compiler_params=pltpu.CompilerParams(
            dimension_semantics=("parallel",),          # megacore split on v7x
            allow_input_fusion=[True, False, False, False, False],  # fuse x cast/pad
            vmem_limit_bytes=56 * 1024 * 1024,
        ),
        cost_estimate=pl.CostEstimate(
            flops=flops, transcendentals=0, bytes_accessed=bytes_accessed),
    )(xb, w1p, b1p, w2p, b2p)

    # Strip batch padding and the lane padding of the logit dim.
    return out[:B, :N]


if __name__ == "__main__":
    # Small shapes consistent with the MyMNISTMLP example (28*28 inputs,
    # num_hidden=32, 10 classes). Batch 256 so the Pallas path is exercised
    # (two 128-row tiles); the small-batch XLA fallback is also checked.
    batch = 256
    in_dim = 28 * 28
    num_hidden = 32
    num_classes = 10

    key = jax.random.PRNGKey(0)
    kx, k1, k2, k3, k4 = jax.random.split(key, 5)

    x = jax.random.normal(kx, (batch, in_dim), dtype=jnp.float32)
    w1 = jax.random.normal(k1, (in_dim, num_hidden), dtype=jnp.float32) * 0.02
    b1 = jax.random.normal(k2, (1, num_hidden), dtype=jnp.float32) * 0.02
    w2 = jax.random.normal(k3, (num_hidden, num_classes), dtype=jnp.float32) * 0.02
    b2 = jax.random.normal(k4, (1, num_classes), dtype=jnp.float32) * 0.02

    params = prepare_mlp_params(w1, b1, w2, b2)   # one-time pad/cast

    logits = renate_mlp_forward(x, params)
    logits = jax.block_until_ready(logits)
    assert logits.shape == (batch, num_classes)
    logits_f32 = logits.astype(jnp.float32)

    # Reference mimicking the kernel's numerics (bf16 MXU operands, f32
    # accumulation / elementwise, bf16 output), so tolerances stay tight.
    xb = x.astype(jnp.bfloat16).astype(jnp.float32)
    w1b = w1.astype(jnp.bfloat16).astype(jnp.float32)
    w2b = w2.astype(jnp.bfloat16).astype(jnp.float32)
    h_ref = jnp.maximum(xb @ w1b + b1, 0.0)
    h_ref = h_ref.astype(jnp.bfloat16).astype(jnp.float32)
    ref_bf16 = (h_ref @ w2b + b2).astype(jnp.bfloat16).astype(jnp.float32)
    assert jnp.allclose(logits_f32, ref_bf16, atol=2e-2, rtol=2e-2)

    # Loose sanity check against the pure-f32 reference (bf16 rounding error).
    ref_f32 = jnp.maximum(x @ w1 + b1, 0.0) @ w2 + b2
    assert jnp.allclose(logits_f32, ref_f32, atol=5e-2, rtol=5e-2)

    # Small-batch XLA fallback path agrees with the Pallas path.
    small = jax.block_until_ready(renate_mlp_forward(x[:8], params))
    assert small.shape == (8, num_classes)
    assert jnp.allclose(small.astype(jnp.float32), logits_f32[:8],
                        atol=2e-2, rtol=2e-2)

    print("KERNEL_OK")
</pallas_src>

<mosaic_0001>
module attributes {stable_mosaic.version = 11 : i64} {
  func.func @_mlp_kernel(%arg0: i32, %arg1: memref<128x784xbf16, #tpu.memory_space<vmem>>, %arg2: memref<784x128xbf16, #tpu.memory_space<vmem>>, %arg3: memref<1x128xf32, #tpu.memory_space<vmem>>, %arg4: memref<128x128xbf16, #tpu.memory_space<vmem>>, %arg5: memref<1x128xf32, #tpu.memory_space<vmem>>, %arg6: memref<128x128xbf16, #tpu.memory_space<vmem>>) attributes {dimension_semantics = [#tpu.dimension_semantics<parallel>], iteration_bounds = array<i64: 2>, scalar_prefetch = 0 : i64, scratch_operands = 0 : i64, tpu.core_type = #tpu.core_type<tc>, window_params = [{transform_indices = @transform_0, window_bounds = array<i64: 128, 784>}, {pipeline_mode = #tpu.pipeline_mode<synchronous>, transform_indices = @transform_1, window_bounds = array<i64: 784, 128>}, {pipeline_mode = #tpu.pipeline_mode<synchronous>, transform_indices = @transform_2, window_bounds = array<i64: 1, 128>}, {pipeline_mode = #tpu.pipeline_mode<synchronous>, transform_indices = @transform_3, window_bounds = array<i64: 128, 128>}, {pipeline_mode = #tpu.pipeline_mode<synchronous>, transform_indices = @transform_4, window_bounds = array<i64: 1, 128>}, {transform_indices = @transform_5, window_bounds = array<i64: 128, 128>}]} {
    %c0 = arith.constant 0 : index
    %c0_0 = arith.constant 0 : index
    %0 = vector.load %arg1[%c0, %c0_0] : memref<128x784xbf16, #tpu.memory_space<vmem>>, vector<128x784xbf16>
    %c0_1 = arith.constant 0 : index
    %c0_2 = arith.constant 0 : index
    %1 = vector.load %arg2[%c0_1, %c0_2] : memref<784x128xbf16, #tpu.memory_space<vmem>>, vector<784x128xbf16>
    %cst = arith.constant dense<0.000000e+00> : vector<128x128xf32>
    %2 = tpu.matmul %0, %1, %cst {dimension_numbers = #tpu.dot_dimension_numbers<[1], [0], [0], [1], [0, 0, 1, 1], [], []>} : vector<128x784xbf16>, vector<784x128xbf16>, vector<128x128xf32> -> vector<128x128xf32>
    %c0_3 = arith.constant 0 : index
    %c0_4 = arith.constant 0 : index
    %3 = vector.load %arg3[%c0_3, %c0_4] : memref<1x128xf32, #tpu.memory_space<vmem>>, vector<1x128xf32>
    %4 = vector.broadcast %3 : vector<1x128xf32> to vector<128x128xf32>
    %5 = arith.addf %2, %4 : vector<128x128xf32>
    %cst_5 = arith.constant 0.000000e+00 : f32
    %6 = vector.broadcast %cst_5 : f32 to vector<128x128xf32>
    %7 = arith.maximumf %5, %6 : vector<128x128xf32>
    %8 = arith.truncf %7 : vector<128x128xf32> to vector<128x128xbf16>
    %c0_6 = arith.constant 0 : index
    %c0_7 = arith.constant 0 : index
    %9 = vector.load %arg4[%c0_6, %c0_7] : memref<128x128xbf16, #tpu.memory_space<vmem>>, vector<128x128xbf16>
    %cst_8 = arith.constant dense<0.000000e+00> : vector<128x128xf32>
    %10 = tpu.matmul %8, %9, %cst_8 {dimension_numbers = #tpu.dot_dimension_numbers<[1], [0], [0], [1], [0, 0, 1, 1], [], []>} : vector<128x128xbf16>, vector<128x128xbf16>, vector<128x128xf32> -> vector<128x128xf32>
    %c0_9 = arith.constant 0 : index
    %c0_10 = arith.constant 0 : index
    %11 = vector.load %arg5[%c0_9, %c0_10] : memref<1x128xf32, #tpu.memory_space<vmem>>, vector<1x128xf32>
    %12 = vector.broadcast %11 : vector<1x128xf32> to vector<128x128xf32>
    %13 = arith.addf %10, %12 : vector<128x128xf32>
    %14 = arith.truncf %13 : vector<128x128xf32> to vector<128x128xbf16>
    %c0_11 = arith.constant 0 : index
    %c0_12 = arith.constant 0 : index
    %15 = vector.load %arg6[%c0_11, %c0_12] : memref<128x128xbf16, #tpu.memory_space<vmem>>, vector<128x128xbf16>
    tpu.vector_store %arg6[%c0_11, %c0_12], %14 {strides = array<i32>} : memref<128x128xbf16, #tpu.memory_space<vmem>>, vector<128x128xbf16>,
    return
  }
  func.func @transform_0(%arg0: i32) -> (i32, i32) {
    %c0_i32 = arith.constant 0 : i32
    %c0_i32_0 = arith.constant 0 : i32
    return %arg0, %c0_i32 : i32, i32
  }
  func.func @transform_1(%arg0: i32) -> (i32, i32) {
    %c0_i32 = arith.constant 0 : i32
    %c0_i32_0 = arith.constant 0 : i32
    %c0_i32_1 = arith.constant 0 : i32
    return %c0_i32, %c0_i32_0 : i32, i32
  }
  func.func @transform_2(%arg0: i32) -> (i32, i32) {
    %c0_i32 = arith.constant 0 : i32
    %c0_i32_0 = arith.constant 0 : i32
    %c0_i32_1 = arith.constant 0 : i32
    return %c0_i32, %c0_i32_0 : i32, i32
  }
  func.func @transform_3(%arg0: i32) -> (i32, i32) {
    %c0_i32 = arith.constant 0 : i32
    %c0_i32_0 = arith.constant 0 : i32
    %c0_i32_1 = arith.constant 0 : i32
    return %c0_i32, %c0_i32_0 : i32, i32
  }
  func.func @transform_4(%arg0: i32) -> (i32, i32) {
    %c0_i32 = arith.constant 0 : i32
    %c0_i32_0 = arith.constant 0 : i32
    %c0_i32_1 = arith.constant 0 : i32
    return %c0_i32, %c0_i32_0 : i32, i32
  }
  func.func @transform_5(%arg0: i32) -> (i32, i32) {
    %c0_i32 = arith.constant 0 : i32
    %c0_i32_0 = arith.constant 0 : i32
    return %arg0, %c0_i32 : i32, i32
  }
}

</mosaic_0001>

<bundles_post_ra>
// kernel: tpu_custom_call.1
= control target key start
LH: loop header
LB: loop body
LE: loop exit
PB: predicated region body
PF: predicated region fallthrough
CT: control target
= control target key end

     0   :  { %10 = vsyncpa [#allocation3], 0  ;;  %s2826_s0 = inlined_call_operand.vmem [shape: bf16[256,784], index: 0, kind: input, shape index: {}]   ;;  %s2827_s1 = inlined_call_operand.vmem [shape: bf16[784,128], index: 1, kind: input, shape index: {}]   ;;  %s2828_s2 = inlined_call_operand.vmem [shape: f32[1,128], index: 2, kind: input, shape index: {}]   ;;  %s2829_s3 = inlined_call_operand.vmem [shape: bf16[128,128], index: 3, kind: input, shape index: {}]   ;;  %s2830_s4 = inlined_call_operand.vmem [shape: f32[1,128], index: 4, kind: input, shape index: {}]   ;;  %s2831_s5 = inlined_call_operand.hbm [shape: bf16[256,128], index: 5, kind: output, shape index: {}]  }
   0x1   :  { %12 = vsyncpa [#allocation3 + $0x1], 0  ;;  %s2362_s18 = smov 0   ;;  %s2364_s19 = smov 0  }
   0x2   :  { %s2366_s20 = smov 0   ;;  %s2368_s21 = smov 0  }
   0x3 LB: > { %s2383_s22 = sadd.s32 4294967295, %s2328_s21   ;;  %s1589_s23 = sadd.s32 4294967294, %s2328_s21   ;;  %s2328_s21 = sphi %s2368_s21, %s2837_s21   ;;  %s2324_s20 = sphi %s2366_s20, %s2836_s20   ;;  %s2320_s19 = sphi %s2364_s19, %s2835_s19   ;;  %s2316_s18 = sphi %s2362_s18, %s2834_s18  }
   0x4   : > { %s2387_s24 = sadd.s32 1, %s2328_s21   ;;  %s135_s25 = sadd.s32 1, %s2324_s20 }
   0x5   : > { %s132_s26 = ssub.s32 %s2328_s21, %s2387_s24  ;;  %p145_p0 = scmp.ne.s32.totalorder %s2324_s20, %s2320_s19 }
   0x6   : > { %p133_p1 = scmp.eq.s32.totalorder %s132_s26, 0  ;;  %p146_p2 = scmp.eq.s32.totalorder %s2383_s22, 1 }
   0x7   : > { %p151_p3 = scmp.ne.s32.totalorder %s2320_s19, %s2316_s18  ;;  %p152_p4 = scmp.eq.s32.totalorder %s1589_s23, 1 }
   0x8   : > { %s2398_s27 = scalar_select %p133_p1, %s2324_s20, %s135_s25  }
   0x9   : > { %p2400_p5 = por %p146_p2, %p145_p0  ;;  %p2404_p6 = por %p152_p4, %p151_p3 }
   0xa   : > { %p1592_p7 = scmp.ge.s32.totalorder %s2328_s21, 1  ;;  %p192_p8 = scmp.lt.s32.totalorder %s2328_s21, 3 }
   0xc   : > { %p193_p9 = pnand %p1592_p7, %p192_p8 }
   0xd   : > { %s1594_s13 = sshll.u32 (!%p193_p9), %s2383_s22, 4  ;;  %s2174_s7 = sshll.u32 (!%p193_p9), %s2383_s22, 6 }
   0xe   : > { %196 = sbr.rel (%p193_p9) target bundleno = 587 (0x24b), region = 40  ;;  %p222_p10 = scmp.lt.s32.totalorder (!%p193_p9), %s1594_s13, 31 }
   0xf   : > { %s1523_s10 = scalar_lea.hbm (!%p193_p9), %s2831_s5, %s2174_s7  ;;  %s2286_s23 = scalar_lea.hbm (!%p193_p9), %s2831_s5, 128 }
  0x13   : > { %v2124_v0 = vld [vmem:[%s2827_s1 + $0x38] sm:$0xff]  ;;  %v2123_v4 = vld [vmem:[%s2827_s1 + $0x30] sm:$0xff]  ;;  %v2122_v8 = vld [vmem:[%s2827_s1 + $0x28] sm:$0xff]  ;;  %s2839_s13 = smov (!%p222_p10, %s1594_s13), 31  ;;  %vm970_vm0 = vcmask 130048  }
  0x14   : > { %v2132_v1 = vld [vmem:[%s2827_s1 + $0x78] sm:$0xff]  ;;  %995 = vmatpush.bf16.msra.mxu0 %v2124_v0  ;;  %v2131_v5 = vld [vmem:[%s2827_s1 + $0x70] sm:$0xff]  ;;  %v2130_v9 = vld [vmem:[%s2827_s1 + $0x68] sm:$0xff]  ;;  %s2222_s25 = smul.u32 28, %s2839_s13  ;;  %s1526_s13 = sshll.u32 %s1523_s10, 4  ;;  %s1527_s13 = int_to_ptr.hbm [resolvable:$true] %s1526_s13 }
  0x15   : > { %v2140_v2 = vld [vmem:[%s2827_s1 + $0xb8] sm:$0xff]  ;;  %1044 = vmatpush.bf16.msra.mxu1 %v2132_v1  ;;  %v2139_v6 = vld [vmem:[%s2827_s1 + $0xb0] sm:$0xff]  ;;  %v2138_v10 = vld [vmem:[%s2827_s1 + $0xa8] sm:$0xff]  ;;  %s2280_s15 = sshra.s32 %s1527_s13, 4  ;;  %s2281_s15 = int_to_ptr.hbm [resolvable:$true] %s2280_s15 }
  0x16   : > { %v2148_v3 = vld [vmem:[%s2827_s1 + $0xf8] sm:$0xff]  ;;  %1093 = vmatpush.bf16.msra.mxu2 %v2140_v2  ;;  %v2147_v7 = vld [vmem:[%s2827_s1 + $0xf0] sm:$0xff]  ;;  %v2146_v11 = vld [vmem:[%s2827_s1 + $0xe8] sm:$0xff]  ;;  %s2492_s14 = scalar_lea.vmem %s2826_s0, %s2222_s25  ;;  %s2282_s16 = scalar_lea.hbm %s2281_s15, 64 }
  0x17   : > { %1142 = vmatpush.bf16.msra.mxu3 %v2148_v3  ;;  %v2121_v12 = vld [vmem:[%s2827_s1 + $0x20] sm:$0xff]  ;;  %v2120_v16 = vld [vmem:[%s2827_s1 + $0x18] sm:$0xff]  ;;  %v2119_v20 = vld [vmem:[%s2827_s1 + $0x10] sm:$0xff]  ;;  %p2283_p11 = scmp.ne.s32.totalorder %s2281_s15, %s2282_s16  ;;  %p2287_p0 = scmp.lt.s32.totalorder %s2281_s15, %s2831_s5 }
  0x18   : > { %996 = vmatpush.bf16.msra.mxu0 %v2123_v4  ;;  %v2129_v13 = vld [vmem:[%s2827_s1 + $0x60] sm:$0xff]  ;;  %v2128_v17 = vld [vmem:[%s2827_s1 + $0x58] sm:$0xff]  ;;  %v2127_v21 = vld [vmem:[%s2827_s1 + $0x50] sm:$0xff]  ;;  %p2288_p1 = scmp.lt.s32.totalorder %s2286_s23, %s2282_s16 }
  0x19   : > { %1045 = vmatpush.bf16.msra.mxu1 %v2131_v5  ;;  %v2137_v14 = vld [vmem:[%s2827_s1 + $0xa0] sm:$0xff]  ;;  %v2136_v18 = vld [vmem:[%s2827_s1 + $0x98] sm:$0xff]  ;;  %v2135_v22 = vld [vmem:[%s2827_s1 + $0x90] sm:$0xff]  ;;  %p2284_p12 = pnand %p2283_p11, %p2400_p5 }
  0x1a   : > { %1094 = vmatpush.bf16.msra.mxu2 %v2139_v6  ;;  %v2145_v15 = vld [vmem:[%s2827_s1 + $0xe0] sm:$0xff]  ;;  %v2144_v19 = vld [vmem:[%s2827_s1 + $0xd8] sm:$0xff]  ;;  %v2143_v23 = vld [vmem:[%s2827_s1 + $0xd0] sm:$0xff]  ;;  %p2289_p2 = por %p2288_p1, %p2287_p0 }
  0x1b   : > { %1143 = vmatpush.bf16.msra.mxu3 %v2147_v7  ;;  %v2118_v24 = vld [vmem:[%s2827_s1 + $0x8] sm:$0xff]  ;;  %v2117_v28 = vld [vmem:[%s2827_s1] sm:$0xff]  ;;  %v2064_v33 = vld [vmem:[%s2492_s14 + $0x18] sm:$0xf0]  ;;  %p2285_p13 = pneg %p2284_p12 }
  0x1c   : > { %997 = vmatpush.bf16.msra.mxu0 %v2122_v8  ;;  %v2126_v25 = vld [vmem:[%s2827_s1 + $0x48] sm:$0xff]  ;;  %v2125_v29 = vld [vmem:[%s2827_s1 + $0x40] sm:$0xff]  ;;  %v2156_v41 = vld [vmem:[%s2827_s1 + $0x138] sm:$0xff] }
  0x1d   : > { %1046 = vmatpush.bf16.msra.mxu1 %v2130_v9  ;;  %v2134_v26 = vld [vmem:[%s2827_s1 + $0x88] sm:$0xff]  ;;  %v2133_v30 = vld [vmem:[%s2827_s1 + $0x80] sm:$0xff]  ;;  %v2164_v46 = vld [vmem:[%s2827_s1 + $0x178] sm:$0xff]  ;;  %p2290_p3 = pnand %p2289_p2, %p2285_p13 }
  0x1e   : > { %1095 = vmatpush.bf16.msra.mxu2 %v2138_v10  ;;  %v2142_v27 = vld [vmem:[%s2827_s1 + $0xc8] sm:$0xff]  ;;  %v2141_v31 = vld [vmem:[%s2827_s1 + $0xc0] sm:$0xff]  ;;  %v2155_v47 = vld [vmem:[%s2827_s1 + $0x130] sm:$0xff] }
  0x1f   : > { %1144 = vmatpush.bf16.msra.mxu3 %v2146_v11  ;;  %v1598_v32 = vld [vmem:[%s2492_s14] sm:$0xf]  ;;  %v2061_v34 = vld [vmem:[%s2492_s14 + $0x4] sm:$0xf]  ;;  %v1606_v36 = vld [vmem:[%s2492_s14 + $0x8] sm:$0xf] }
  0x20   : > { %998 = vmatpush.bf16.msra.mxu0 %v2121_v12  ;;  %v1600_v35 = vld [vmem:[%s2492_s14 + $0x1c] sm:$0xf0]  ;;  %v2065_v37 = vld [vmem:[%s2492_s14 + $0x20] sm:$0xf0]  ;;  %v2062_v38 = vld [vmem:[%s2492_s14 + $0xc] sm:$0xf]  ;;  %v1599_v42 = vor.u32 %v2064_v33, %v1598_v32 }
  0x21   : > { %1047 = vmatpush.bf16.msra.mxu1 %v2129_v13  ;;  %v1608_v39 = vld [vmem:[%s2492_s14 + $0x24] sm:$0xf0]  ;;  %v2165_v40 = vld [vmem:[%s2827_s1 + $0x180] sm:$0xff]  ;;  %v1603_v43 = vor.u32 %v2061_v34, %v1600_v35  ;;  %v1607_v44 = vor.u32 %v2065_v37, %v1606_v36  ;;  %v2163_v48 = vld [vmem:[%s2827_s1 + $0x170] sm:$0xff] }
  0x22   : > { %1096 = vmatpush.bf16.msra.mxu2 %v2137_v14  ;;  %v1611_v45 = vor.u32 %v2062_v38, %v1608_v39  ;;  %v2154_v49 = vld [vmem:[%s2827_s1 + $0x128] sm:$0xff]  ;;  %v1626_v51 = vld [vmem:[%s2492_s14 + $0x38] sm:$0xf]  ;;  %v2071_v52 = vld [vmem:[%s2492_s14 + $0x50] sm:$0xf0] }
  0x23   : > { %1145 = vmatpush.bf16.msra.mxu3 %v2145_v15  ;;  %v2162_v50 = vld [vmem:[%s2827_s1 + $0x168] sm:$0xff]  ;;  %v2068_v53 = vld [vmem:[%s2492_s14 + $0x3c] sm:$0xf]  ;;  %v1628_v54 = vld [vmem:[%s2492_s14 + $0x54] sm:$0xf0]  ;;  %v1627_v59 = vor.u32 %v2071_v52, %v1626_v51 }
  0x24   : > { %999 = vmatpush.bf16.msra.mxu0 %v2120_v16  ;;  %v1634_v55 = vld [vmem:[%s2492_s14 + $0x40] sm:$0xf]  ;;  %v2072_v56 = vld [vmem:[%s2492_s14 + $0x58] sm:$0xf0]  ;;  %v2069_v57 = vld [vmem:[%s2492_s14 + $0x44] sm:$0xf]  ;;  %v1631_v60 = vor.u32 %v2068_v53, %v1628_v54 }
  0x25   : > { %1048 = vmatpush.bf16.msra.mxu1 %v2128_v17  ;;  %v1636_v58 = vld [vmem:[%s2492_s14 + $0x5c] sm:$0xf0]  ;;  %v1635_v61 = vor.u32 %v2072_v56, %v1634_v55  ;;  %v1654_v1 = vld [vmem:[%s2492_s14 + $0x70] sm:$0xf]  ;;  %v2078_v2 = vld [vmem:[%s2492_s14 + $0x88] sm:$0xf0] }
  0x26   : > { %1097 = vmatpush.bf16.msra.mxu2 %v2136_v18  ;;  %v1639_v62 = vor.u32 %v2069_v57, %v1636_v58  ;;  %v2153_v63 = vld [vmem:[%s2827_s1 + $0x120] sm:$0xff]  ;;  %v2075_v3 = vld [vmem:[%s2492_s14 + $0x74] sm:$0xf]  ;;  %v1656_v4 = vld [vmem:[%s2492_s14 + $0x8c] sm:$0xf0]  ;;  %v1655_v9 = vor.u32 %v2078_v2, %v1654_v1 }
  0x27   : > { %1146 = vmatpush.bf16.msra.mxu3 %v2144_v19  ;;  %v2161_v0 = vld [vmem:[%s2827_s1 + $0x160] sm:$0xff]  ;;  %v1662_v5 = vld [vmem:[%s2492_s14 + $0x78] sm:$0xf]  ;;  %v2079_v6 = vld [vmem:[%s2492_s14 + $0x90] sm:$0xf0]  ;;  %v1659_v10 = vor.u32 %v2075_v3, %v1656_v4 }
  0x28   : > { %1000 = vmatpush.bf16.msra.mxu0 %v2119_v20  ;;  %v2076_v7 = vld [vmem:[%s2492_s14 + $0x7c] sm:$0xf]  ;;  %v1664_v8 = vld [vmem:[%s2492_s14 + $0x94] sm:$0xf0]  ;;  %v1663_v11 = vor.u32 %v2079_v6, %v1662_v5  ;;  %v1682_v15 = vld [vmem:[%s2492_s14 + $0xa8] sm:$0xf] }
  0x29   : > { %1049 = vmatpush.bf16.msra.mxu1 %v2127_v21  ;;  %v1667_v12 = vor.u32 %v2076_v7, %v1664_v8  ;;  %v2152_v13 = vld [vmem:[%s2827_s1 + $0x118] sm:$0xff]  ;;  %v2085_v16 = vld [vmem:[%s2492_s14 + $0xc0] sm:$0xf0]  ;;  %v2082_v17 = vld [vmem:[%s2492_s14 + $0xac] sm:$0xf] }
  0x2a   : > { %1098 = vmatpush.bf16.msra.mxu2 %v2135_v22  ;;  %v2160_v14 = vld [vmem:[%s2827_s1 + $0x158] sm:$0xff]  ;;  %v1684_v18 = vld [vmem:[%s2492_s14 + $0xc4] sm:$0xf0]  ;;  %v1690_v19 = vld [vmem:[%s2492_s14 + $0xb0] sm:$0xf] }
  0x2b   : > { %1147 = vmatpush.bf16.msra.mxu3 %v2143_v23  ;;  %v2086_v20 = vld [vmem:[%s2492_s14 + $0xc8] sm:$0xf0]  ;;  %v2083_v21 = vld [vmem:[%s2492_s14 + $0xb4] sm:$0xf]  ;;  %v1692_v22 = vld [vmem:[%s2492_s14 + $0xcc] sm:$0xf0]  ;;  %v1683_v23 = vor.u32 %v2085_v16, %v1682_v15 }
  0x2c   : > { %1001 = vmatpush.bf16.msra.mxu0 %v2118_v24  ;;  %v1687_v24 = vor.u32 %v2082_v17, %v1684_v18  ;;  %v1712_v32 = vld [vmem:[%s2492_s14 + $0xfc] sm:$0xf0]  ;;  %v1718_v33 = vld [vmem:[%s2492_s14 + $0xe8] sm:$0xf]  ;;  %v2093_v34 = vld [vmem:[%s2492_s14 + $0x100] sm:$0xf0] }
  0x2d   : > { %1050 = vmatpush.bf16.msra.mxu1 %v2126_v25  ;;  %v1691_v25 = vor.u32 %v2086_v20, %v1690_v19  ;;  %v2090_v35 = vld [vmem:[%s2492_s14 + $0xec] sm:$0xf]  ;;  %v1720_v36 = vld [vmem:[%s2492_s14 + $0x104] sm:$0xf0]  ;;  %v1719_v39 = vor.u32 %v2093_v34, %v1718_v33  ;;  %v2149_v55 = vld [vmem:[%s2827_s1 + $0x100] sm:$0xff] }
  0x2e   : > { %1099 = vmatpush.bf16.msra.mxu2 %v2134_v26  ;;  %v1695_v26 = vor.u32 %v2083_v21, %v1692_v22  ;;  %v2157_v56 = vld [vmem:[%s2827_s1 + $0x140] sm:$0xff]  ;;  %v1766_v57 = vld [vmem:[%s2492_s14 + $0x150] sm:$0xf]  ;;  %v2106_v58 = vld [vmem:[%s2492_s14 + $0x168] sm:$0xf0] }
  0x2f   : > { %1148 = vmatpush.bf16.msra.mxu3 %v2142_v27  ;;  %v2151_v27 = vld [vmem:[%s2827_s1 + $0x110] sm:$0xff]  ;;  %v1767_v1 = vor.u32 %v2106_v58, %v1766_v57  ;;  %v1794_v5 = vld [vmem:[%s2492_s14 + $0x188] sm:$0xf]  ;;  %v2113_v6 = vld [vmem:[%s2492_s14 + $0x1a0] sm:$0xf0] }
  0x30   : > { %1002 = vmatpush.bf16.msra.mxu0 %v2117_v28  ;;  %v2159_v28 = vld [vmem:[%s2827_s1 + $0x150] sm:$0xff]  ;;  %v2110_v7 = vld [vmem:[%s2492_s14 + $0x18c] sm:$0xf]  ;;  %v1796_v8 = vld [vmem:[%s2492_s14 + $0x1a4] sm:$0xf0] }
  0x31   : > { %1051 = vmatpush.bf16.msra.mxu1 %v2125_v29  ;;  %v1710_v29 = vld [vmem:[%s2492_s14 + $0xe0] sm:$0xf]  ;;  %v2173_v17 = vld [vmem:[%s2829_s3 + $0x38] sm:$0xff]  ;;  %v1614_v18 = vld [vmem:[%s2492_s14 + $0x10] sm:$0xf] }
  0x32   : > { %1100 = vmatpush.bf16.msra.mxu2 %v2133_v30  ;;  %v2092_v30 = vld [vmem:[%s2492_s14 + $0xf8] sm:$0xf0]  ;;  %v2066_v19 = vld [vmem:[%s2492_s14 + $0x28] sm:$0xf0]  ;;  %v2063_v20 = vld [vmem:[%s2492_s14 + $0x14] sm:$0xf] }
  0x33   : > { %1149 = vmatpush.bf16.msra.mxu3 %v2141_v31  ;;  %1003 = vmatmul.bf16.vlgmr.msra.gmra.mxu0 %v1599_v42  ;;  %v2089_v31 = vld [vmem:[%s2492_s14 + $0xe4] sm:$0xf]  ;;  %v1711_v37 = vor.u32 %v2092_v30, %v1710_v29  ;;  %v2158_v42 = vld [vmem:[%s2827_s1 + $0x148] sm:$0xff]  ;;  %v1616_v21 = vld [vmem:[%s2492_s14 + $0x2c] sm:$0xf0] }
  0x34   : > { %1191 = vmatpush.bf16.msrb.mxu0 %v2156_v41  ;;  %1052 = vmatmul.bf16.vlgmr.msra.gmra.mxu1 %v1603_v43  ;;  %v1715_v38 = vor.u32 %v2089_v31, %v1712_v32  ;;  %v2150_v41 = vld [vmem:[%s2827_s1 + $0x108] sm:$0xff]  ;;  %v1738_v43 = vld [vmem:[%s2492_s14 + $0x118] sm:$0xf]  ;;  %v2637_v22 = vld [vmem:[%s2828_s2] ss:$0 sm:$0xff] }
  0x35   : > { %1101 = vmatmul.bf16.vlgmr.msra.gmra.mxu2 %v1607_v44  ;;  %1240 = vmatpush.bf16.msrb.mxu1 %v2164_v46  ;;  %v2099_v44 = vld [vmem:[%s2492_s14 + $0x130] sm:$0xf0]  ;;  %v1740_v46 = vld [vmem:[%s2492_s14 + $0x134] sm:$0xf0] }
  0x36   : > { %1296 = vmatpush.bf16.msrb.mxu2 %v2165_v40  ;;  %1150 = vmatmul.bf16.vlgmr.msra.gmra.mxu3 %v1611_v45  ;;  %v1723_v40 = vor.u32 %v2090_v35, %v1720_v36  ;;  %v2096_v45 = vld [vmem:[%s2492_s14 + $0x11c] sm:$0xf]  ;;  %v1739_v51 = vor.u32 %v2099_v44, %v1738_v43  ;;  %v2172_v32 = vld [vmem:[%s2829_s3 + $0x30] sm:$0xff]  ;;  %v2074_v44 = vld [vmem:[%s2492_s14 + $0x68] sm:$0xf0] }
  0x37   : > { %v1743_v52 = vor.u32 %v2096_v45, %v1740_v46  ;;  %1430 = vmatpush.bf16.msrb.mxu3 %v2173_v17  ;;  %v1650_v43 = vld [vmem:[%s2492_s14 + $0x50] sm:$0xf] }
  0x38   : > { %1192 = vmatpush.bf16.msrb.mxu0 %v2155_v47  ;;  %v1746_v47 = vld [vmem:[%s2492_s14 + $0x120] sm:$0xf] }
  0x39   : > { %1241 = vmatpush.bf16.msrb.mxu1 %v2163_v48  ;;  %v2100_v48 = vld [vmem:[%s2492_s14 + $0x138] sm:$0xf0] }
  0x3a   : > { %v1747_v53 = vor.u32 %v2100_v48, %v1746_v47 }
  0x3b   : > { %1431 = vmatpush.bf16.msrb.mxu3 %v2172_v32 }
  0x3c   : > { %1193 = vmatpush.bf16.msrb.mxu0 %v2154_v49  ;;  %v2097_v49 = vld [vmem:[%s2492_s14 + $0x124] sm:$0xf] }
  0x3d   : > { %1242 = vmatpush.bf16.msrb.mxu1 %v2162_v50  ;;  %v1748_v50 = vld [vmem:[%s2492_s14 + $0x13c] sm:$0xf0] }
  0x3e   : > { %v1751_v54 = vor.u32 %v2097_v49, %v1748_v50 }
  0x40   : > { %1194 = vmatpush.bf16.msrb.mxu0 %v2153_v63  ;;  %v2104_v63 = vld [vmem:[%s2492_s14 + $0x15c] sm:$0xf] }
  0x41   : > { %1243 = vmatpush.bf16.msrb.mxu1 %v2161_v0  ;;  %v1776_v0 = vld [vmem:[%s2492_s14 + $0x174] sm:$0xf0] }
  0x42   : > { %v1779_v4 = vor.u32 %v2104_v63, %v1776_v0  ;;  %v2077_v63 = vld [vmem:[%s2492_s14 + $0x84] sm:$0xf]  ;;  %v1672_v0 = vld [vmem:[%s2492_s14 + $0x9c] sm:$0xf0] }
  0x43   : > { %1008 = vmatmul.bf16.gmra.mxu0 %v1627_v59  ;;  %v2103_v59 = vld [vmem:[%s2492_s14 + $0x154] sm:$0xf] }
  0x44   : > { %1057 = vmatmul.bf16.gmra.mxu1 %v1631_v60  ;;  %1195 = vmatpush.bf16.msrb.mxu0 %v2152_v13  ;;  %v1768_v60 = vld [vmem:[%s2492_s14 + $0x16c] sm:$0xf0]  ;;  %v1795_v13 = vor.u32 %v2113_v6, %v1794_v5  ;;  %v1675_v5 = vor.u32 %v2077_v63, %v1672_v0 }
  0x45   : > { %1106 = vmatmul.bf16.gmra.mxu2 %v1635_v61  ;;  %1244 = vmatpush.bf16.msrb.mxu1 %v2160_v14  ;;  %v1774_v61 = vld [vmem:[%s2492_s14 + $0x158] sm:$0xf]  ;;  %v1771_v2 = vor.u32 %v2103_v59, %v1768_v60  ;;  %v1799_v14 = vor.u32 %v2110_v7, %v1796_v8 }
  0x46   : > { %1155 = vmatmul.bf16.gmra.mxu3 %v1639_v62  ;;  %v2107_v62 = vld [vmem:[%s2492_s14 + $0x170] sm:$0xf0] }
  0x47   : > { %v1775_v3 = vor.u32 %v2107_v62, %v1774_v61  ;;  %v1670_v61 = vld [vmem:[%s2492_s14 + $0x80] sm:$0xf]  ;;  %v2080_v62 = vld [vmem:[%s2492_s14 + $0x98] sm:$0xf0] }
  0x48   : > { %1196 = vmatpush.bf16.msrb.mxu0 %v2151_v27 }
  0x49   : > { %1245 = vmatpush.bf16.msrb.mxu1 %v2159_v28 }
  0x4c   : > { %1197 = vmatpush.bf16.msrb.mxu0 %v2150_v41  ;;  %v2070_v41 = vld [vmem:[%s2492_s14 + $0x4c] sm:$0xf] }
  0x4d   : > { %1246 = vmatpush.bf16.msrb.mxu1 %v2158_v42  ;;  %v1644_v42 = vld [vmem:[%s2492_s14 + $0x64] sm:$0xf0] }
  0x4e   : > { %v1647_v47 = vor.u32 %v2070_v41, %v1644_v42 }
  0x50   : > { %1198 = vmatpush.bf16.msrb.mxu0 %v2149_v55 }
  0x51   : > { %1247 = vmatpush.bf16.msrb.mxu1 %v2157_v56 }
  0x53   : > { %1013 = vmatmul.bf16.gmra.mxu0 %v1655_v9  ;;  %v1802_v9 = vld [vmem:[%s2492_s14 + $0x190] sm:$0xf] }
  0x54   : > { %1062 = vmatmul.bf16.gmra.mxu1 %v1659_v10  ;;  %v2114_v10 = vld [vmem:[%s2492_s14 + $0x1a8] sm:$0xf0] }
  0x55   : > { %1111 = vmatmul.bf16.gmra.mxu2 %v1663_v11  ;;  %v2111_v11 = vld [vmem:[%s2492_s14 + $0x194] sm:$0xf]  ;;  %v1803_v15 = vor.u32 %v2114_v10, %v1802_v9 }
  0x56   : > { %1160 = vmatmul.bf16.gmra.mxu3 %v1667_v12  ;;  %v1804_v12 = vld [vmem:[%s2492_s14 + $0x1ac] sm:$0xf0] }
  0x57   : > { %v1807_v16 = vor.u32 %v2111_v11, %v1804_v12  ;;  %v2170_v12 = vld [vmem:[%s2829_s3 + $0x20] sm:$0xff] }
  0x63   : > { %1018 = vmatmul.bf16.gmra.mxu0 %v1683_v23  ;;  %v1622_v23 = vld [vmem:[%s2492_s14 + $0x18] sm:$0xf] }
  0x64   : > { %1067 = vmatmul.bf16.gmra.mxu1 %v1687_v24  ;;  %v2067_v24 = vld [vmem:[%s2492_s14 + $0x30] sm:$0xf0] }
  0x65   : > { %1116 = vmatmul.bf16.gmra.mxu2 %v1691_v25  ;;  %v1615_v25 = vor.u32 %v2066_v19, %v1614_v18  ;;  %v1623_v29 = vor.u32 %v2067_v24, %v1622_v23  ;;  %v1698_v19 = vld [vmem:[%s2492_s14 + $0xb8] sm:$0xf]  ;;  %v1706_v24 = vld [vmem:[%s2492_s14 + $0xc0] sm:$0xf] }
  0x66   : > { %1165 = vmatmul.bf16.gmra.mxu3 %v1695_v26  ;;  %v1619_v26 = vor.u32 %v2063_v20, %v1616_v21  ;;  %v2087_v20 = vld [vmem:[%s2492_s14 + $0xd0] sm:$0xf0]  ;;  %v2084_v21 = vld [vmem:[%s2492_s14 + $0xbc] sm:$0xf]  ;;  %v1700_v23 = vld [vmem:[%s2492_s14 + $0xd4] sm:$0xf0] }
  0x73   : > { %1023 = vmatmul.bf16.gmra.mxu0 %v1711_v37 }
  0x74   : > { %1072 = vmatmul.bf16.gmra.mxu1 %v1715_v38 }
  0x75   : > { %1121 = vmatmul.bf16.gmra.mxu2 %v1719_v39  ;;  %v1642_v39 = vld [vmem:[%s2492_s14 + $0x48] sm:$0xf] }
  0x76   : > { %1170 = vmatmul.bf16.gmra.mxu3 %v1723_v40  ;;  %v2073_v40 = vld [vmem:[%s2492_s14 + $0x60] sm:$0xf0] }
  0x77   : > { %v1643_v46 = vor.u32 %v2073_v40, %v1642_v39 }
  0x83   : > { %1028 = vmatmul.bf16.gmra.mxu0 %v1739_v51  ;;  %v1651_v51 = vor.u32 %v2074_v44, %v1650_v43  ;;  %v1726_v43 = vld [vmem:[%s2492_s14 + $0xf0] sm:$0xf]  ;;  %v2094_v44 = vld [vmem:[%s2492_s14 + $0x108] sm:$0xf0] }
  0x84   : > { %1077 = vmatmul.bf16.gmra.mxu1 %v1743_v52 }
  0x85   : > { %1126 = vmatmul.bf16.gmra.mxu2 %v1747_v53 }
  0x86   : > { %1175 = vmatmul.bf16.gmra.mxu3 %v1751_v54  ;;  %v2171_v54 = vld [vmem:[%s2829_s3 + $0x28] sm:$0xff] }
  0x87   : > { %1432 = vmatpush.bf16.msrb.mxu3 %v2171_v54 }
  0x8b   : > { %1433 = vmatpush.bf16.msrb.mxu3 %v2170_v12 }
  0x93   : > { %1033 = vmatmul.bf16.gmra.mxu0 %v1767_v1  ;;  %v1678_v1 = vld [vmem:[%s2492_s14 + $0x88] sm:$0xf] }
  0x94   : > { %1082 = vmatmul.bf16.gmra.mxu1 %v1771_v2  ;;  %v2081_v2 = vld [vmem:[%s2492_s14 + $0xa0] sm:$0xf0] }
  0x95   : > { %1131 = vmatmul.bf16.gmra.mxu2 %v1775_v3  ;;  %v1679_v9 = vor.u32 %v2081_v2, %v1678_v1 }
  0x96   : > { %1180 = vmatmul.bf16.gmra.mxu3 %v1779_v4  ;;  %v1671_v4 = vor.u32 %v2080_v62, %v1670_v61 }
  0xa3   : > { %1038 = vmatmul.bf16.gmra.mxu0 %v1795_v13 }
  0xa4   : > { %1087 = vmatmul.bf16.gmra.mxu1 %v1799_v14 }
  0xa5   : > { %1136 = vmatmul.bf16.gmra.mxu2 %v1803_v15 }
  0xa6   : > { %1185 = vmatmul.bf16.gmra.mxu3 %v1807_v16 }
  0xb0   : > { %v1004_v27 = vpop.f32.mrf.mxu0 }
  0xb1   : > { %v1053_v28 = vpop.f32.mrf.mxu1  ;;  %v1005_v30 = vadd.f32 %v2637_v22, %v1004_v27  ;;  %v1699_v27 = vor.u32 %v2087_v20, %v1698_v19  ;;  %v2167_v20 = vld [vmem:[%s2829_s3 + $0x8] sm:$0xff] }
  0xb3   : > { %v1054_v31 = vadd.f32 %v1053_v28, %v1005_v30  ;;  %1199 = vmatmul.bf16.vlgmr.msrb.gmra.mxu0 %v1615_v25  ;;  %v2088_v25 = vld [vmem:[%s2492_s14 + $0xd8] sm:$0xf0]  ;;  %v1703_v28 = vor.u32 %v2084_v21, %v1700_v23 }
  0xb4   : > { %1248 = vmatmul.bf16.vlgmr.msrb.gmra.mxu1 %v1619_v26  ;;  %v1707_v32 = vor.u32 %v2088_v25, %v1706_v24 }
  0xb5   : > { %2016 = vmatmul.msk.bf16.vlgmr.msrb.gmra.mxu2 %vm970_vm0, %v1623_v29 }
  0xb8   : > { %v1102_v33 = vpop.f32.mrf.mxu2  ;;  %v1006_v35 = vpop.f32.mrf.mxu0 }
  0xb9   : > { %v2646_v34 = vadd.f32 %v1102_v33, %v1054_v31  ;;  %v1055_v36 = vpop.f32.mrf.mxu1  ;;  %v1007_v37 = vadd.f32 %v2637_v22, %v1006_v35 }
  0xbb   : > { %v1056_v38 = vadd.f32 %v1055_v36, %v1007_v37  ;;  %v2169_v36 = vld [vmem:[%s2829_s3 + $0x18] sm:$0xff] }
  0xbc   : > { %1434 = vmatpush.bf16.msrb.mxu3 %v2169_v36  ;;  %v1151_v36 = vpop.f32.mrf.mxu3 }
  0xc0   : > { %v1104_v45 = vpop.f32.mrf.mxu2  ;;  %v1009_v49 = vpop.f32.mrf.mxu0 }
  0xc1   : > { %v2655_v48 = vadd.f32 %v1104_v45, %v1056_v38  ;;  %v1058_v50 = vpop.f32.mrf.mxu1  ;;  %v1010_v52 = vadd.f32 %v2637_v22, %v1009_v49  ;;  %v2091_v45 = vld [vmem:[%s2492_s14 + $0xf4] sm:$0xf] }
  0xc2   : > { %v2095_v49 = vld [vmem:[%s2492_s14 + $0x110] sm:$0xf0] }
  0xc3   : > { %v1059_v53 = vadd.f32 %v1058_v50, %v1010_v52  ;;  %1204 = vmatmul.bf16.gmra.mxu0 %v1643_v46  ;;  %v1728_v46 = vld [vmem:[%s2492_s14 + $0x10c] sm:$0xf0] }
  0xc4   : > { %1253 = vmatmul.bf16.gmra.mxu1 %v1647_v47  ;;  %v1734_v47 = vld [vmem:[%s2492_s14 + $0xf8] sm:$0xf]  ;;  %v1731_v52 = vor.u32 %v2091_v45, %v1728_v46 }
  0xc5   : > { %2017 = vmatmul.msk.bf16.gmra.mxu2 %vm970_vm0, %v1651_v51  ;;  %v1727_v51 = vor.u32 %v2094_v44, %v1726_v43 }
  0xc8   : > { %v1107_v55 = vpop.f32.mrf.mxu2  ;;  %v1011_v57 = vpop.f32.mrf.mxu0 }
  0xc9   : > { %v2662_v56 = vadd.f32 %v1107_v55, %v1059_v53  ;;  %v1060_v58 = vpop.f32.mrf.mxu1  ;;  %v1012_v59 = vadd.f32 %v2637_v22, %v1011_v57  ;;  %v1735_v57 = vor.u32 %v2095_v49, %v1734_v47  ;;  %v2166_v47 = vld [vmem:[%s2829_s3] sm:$0xff] }
  0xcb   : > { %v1061_v60 = vadd.f32 %v1060_v58, %v1012_v59 }
  0xd0   : > { %v1109_v3 = vpop.f32.mrf.mxu2  ;;  %v1014_v7 = vpop.f32.mrf.mxu0 }
  0xd1   : > { %v2671_v6 = vadd.f32 %v1109_v3, %v1061_v60  ;;  %v1063_v8 = vpop.f32.mrf.mxu1  ;;  %v1015_v10 = vadd.f32 %v2637_v22, %v1014_v7  ;;  %v2168_v60 = vld [vmem:[%s2829_s3 + $0x10] sm:$0xff]  ;;  %v1754_v3 = vld [vmem:[%s2492_s14 + $0x128] sm:$0xf] }
  0xd2   : > { %1435 = vmatpush.bf16.msrb.mxu3 %v2168_v60  ;;  %v1756_v7 = vld [vmem:[%s2492_s14 + $0x144] sm:$0xf0]  ;;  %v2112_v60 = vld [vmem:[%s2492_s14 + $0x19c] sm:$0xf] }
  0xd3   : > { %v1064_v11 = vadd.f32 %v1063_v8, %v1015_v10  ;;  %1209 = vmatmul.bf16.gmra.mxu0 %v1671_v4  ;;  %v2101_v4 = vld [vmem:[%s2492_s14 + $0x140] sm:$0xf0]  ;;  %v1762_v8 = vld [vmem:[%s2492_s14 + $0x130] sm:$0xf] }
  0xd4   : > { %1258 = vmatmul.bf16.gmra.mxu1 %v1675_v5  ;;  %v2098_v5 = vld [vmem:[%s2492_s14 + $0x12c] sm:$0xf] }
  0xd5   : > { %2018 = vmatmul.msk.bf16.gmra.mxu2 %vm970_vm0, %v1679_v9  ;;  %v2102_v9 = vld [vmem:[%s2492_s14 + $0x148] sm:$0xf0]  ;;  %v1759_v12 = vor.u32 %v2098_v5, %v1756_v7 }
  0xd6   : > { %1436 = vmatpush.bf16.msrb.mxu3 %v2167_v20 }
  0xd8   : > { %v1112_v13 = vpop.f32.mrf.mxu2  ;;  %v1016_v15 = vpop.f32.mrf.mxu0 }
  0xd9   : > { %v2678_v14 = vadd.f32 %v1112_v13, %v1064_v11  ;;  %v1065_v16 = vpop.f32.mrf.mxu1  ;;  %v1017_v17 = vadd.f32 %v2637_v22, %v1016_v15  ;;  %v1755_v11 = vor.u32 %v2101_v4, %v1754_v3 }
  0xda   : > { %1437 = vmatpush.bf16.msrb.mxu3 %v2166_v47 }
  0xdb   : > { %v1066_v18 = vadd.f32 %v1065_v16, %v1017_v17  ;;  %v1763_v17 = vor.u32 %v2102_v9, %v1762_v8 }
  0xe0   : > { %v1114_v26 = vpop.f32.mrf.mxu2  ;;  %v1019_v30 = vpop.f32.mrf.mxu0 }
  0xe1   : > { %v2687_v29 = vadd.f32 %v1114_v26, %v1066_v18  ;;  %v1068_v31 = vpop.f32.mrf.mxu1  ;;  %v1020_v33 = vadd.f32 %v2637_v22, %v1019_v30  ;;  %v2108_v30 = vld [vmem:[%s2492_s14 + $0x178] sm:$0xf0] }
  0xe3   : > { %v1069_v35 = vadd.f32 %v1068_v31, %v1020_v33  ;;  %1214 = vmatmul.bf16.gmra.mxu0 %v1699_v27  ;;  %v2105_v31 = vld [vmem:[%s2492_s14 + $0x164] sm:$0xf]  ;;  %v1790_v33 = vld [vmem:[%s2492_s14 + $0x168] sm:$0xf] }
  0xe4   : > { %1263 = vmatmul.bf16.gmra.mxu1 %v1703_v28  ;;  %v1782_v28 = vld [vmem:[%s2492_s14 + $0x160] sm:$0xf] }
  0xe5   : > { %2019 = vmatmul.msk.bf16.gmra.mxu2 %vm970_vm0, %v1707_v32  ;;  %v1784_v32 = vld [vmem:[%s2492_s14 + $0x17c] sm:$0xf0] }
  0xe8   : > { %v1117_v37 = vpop.f32.mrf.mxu2  ;;  %v1021_v39 = vpop.f32.mrf.mxu0 }
  0xe9   : > { %v2694_v38 = vadd.f32 %v1117_v37, %v1069_v35  ;;  %v1070_v40 = vpop.f32.mrf.mxu1  ;;  %v1022_v41 = vadd.f32 %v2637_v22, %v1021_v39  ;;  %v2109_v35 = vld [vmem:[%s2492_s14 + $0x180] sm:$0xf0]  ;;  %v1783_v39 = vor.u32 %v2108_v30, %v1782_v28 }
  0xea   : > { %v1791_v44 = vor.u32 %v2109_v35, %v1790_v33 }
  0xeb   : > { %v1071_v42 = vadd.f32 %v1070_v40, %v1022_v41  ;;  %v1787_v40 = vor.u32 %v2105_v31, %v1784_v32 }
  0xf0   : > { %v1119_v50 = vpop.f32.mrf.mxu2  ;;  %v1024_v54 = vpop.f32.mrf.mxu0 }
  0xf1   : > { %v2703_v53 = vadd.f32 %v1119_v50, %v1071_v42  ;;  %v1073_v55 = vpop.f32.mrf.mxu1  ;;  %v1025_v58 = vadd.f32 %v2637_v22, %v1024_v54  ;;  %v1153_v54 = vpop.f32.mrf.mxu3 }
  0xf2   : > { %v1154_v31 = vadd.f32 %v1153_v54, %v2655_v48 }
  0xf3   : > { %v1074_v59 = vadd.f32 %v1073_v55, %v1025_v58  ;;  %1219 = vmatmul.bf16.gmra.mxu0 %v1727_v51  ;;  %v1810_v58 = vld [vmem:[%s2492_s14 + $0x198] sm:$0xf] }
  0xf4   : > { %1268 = vmatmul.bf16.gmra.mxu1 %v1731_v52 }
  0xf5   : > { %2020 = vmatmul.msk.bf16.gmra.mxu2 %vm970_vm0, %v1735_v57 }
  0xf8   : > { %v1122_v61 = vpop.f32.mrf.mxu2  ;;  %v1026_v63 = vpop.f32.mrf.mxu0 }
  0xf9   : > { %v2710_v62 = vadd.f32 %v1122_v61, %v1074_v59  ;;  %v1075_v0 = vpop.f32.mrf.mxu1  ;;  %v1027_v1 = vadd.f32 %v2637_v22, %v1026_v63  ;;  %v2115_v59 = vld [vmem:[%s2492_s14 + $0x1b0] sm:$0xf0]  ;;  %v1812_v61 = vld [vmem:[%s2492_s14 + $0x1b4] sm:$0xf0]  ;;  %v1818_v63 = vld [vmem:[%s2492_s14 + $0x1a0] sm:$0xf] }
  0xfa   : > { %v1815_v3 = vor.u32 %v2112_v60, %v1812_v61 }
  0xfb   : > { %v1076_v2 = vadd.f32 %v1075_v0, %v1027_v1  ;;  %v2116_v0 = vld [vmem:[%s2492_s14 + $0x1b8] sm:$0xf0]  ;;  %s218_s14 = sand.u32 1, %s2320_s19  }
  0xfc   : > { %v1819_v8 = vor.u32 %v2116_v0, %v1818_v63  ;;  %s1593_s30 = sshll.u32 %s218_s14, 6  ;;  %s1512_s12 = scalar_lea.sflag [#allocation3], %s218_s14 }
  0xfd   : > { %s2782_s6 = scalar_lea.vmem [#allocation2], %s1593_s30 }
  0xfe   : > { %s1524_s11 = sshll.u32 %s2782_s6, 4  ;;  %s1525_s11 = int_to_ptr.vmem [resolvable:$true] %s1524_s11 }
 0x100   : > { %v1124_v10 = vpop.f32.mrf.mxu2  ;;  %v1029_v15 = vpop.f32.mrf.mxu0 }
 0x101   : > { %v2719_v13 = vadd.f32 %v1124_v10, %v1076_v2  ;;  %v1078_v16 = vpop.f32.mrf.mxu1  ;;  %v1030_v18 = vadd.f32 %v2637_v22, %v1029_v15  ;;  %v1811_v2 = vor.u32 %v2115_v59, %v1810_v58  ;;  %v1156_v10 = vpop.f32.mrf.mxu3 }
 0x103   : > { %v1079_v19 = vadd.f32 %v1078_v16, %v1030_v18  ;;  %1224 = vmatmul.bf16.gmra.mxu0 %v1755_v11 }
 0x104   : > { %1273 = vmatmul.bf16.gmra.mxu1 %v1759_v12 }
 0x105   : > { %2021 = vmatmul.msk.bf16.gmra.mxu2 %vm970_vm0, %v1763_v17 }
 0x108   : > { %v1127_v21 = vpop.f32.mrf.mxu2  ;;  %v1031_v24 = vpop.f32.mrf.mxu0 }
 0x109   : > { %v2726_v23 = vadd.f32 %v1127_v21, %v1079_v19  ;;  %v1080_v25 = vpop.f32.mrf.mxu1  ;;  %v1032_v26 = vadd.f32 %v2637_v22, %v1031_v24  ;;  %v1158_v20 = vpop.f32.mrf.mxu3 }
 0x10a   : > { %v1159_v48 = vadd.f32 %v1158_v20, %v2671_v6 }
 0x10b   : > { %v1081_v27 = vadd.f32 %v1080_v25, %v1032_v26 }
 0x110   : > { %v1129_v37 = vpop.f32.mrf.mxu2  ;;  %v1034_v42 = vpop.f32.mrf.mxu0 }
 0x111   : > { %v2735_v41 = vadd.f32 %v1129_v37, %v1081_v27  ;;  %v1083_v43 = vpop.f32.mrf.mxu1  ;;  %v1035_v45 = vadd.f32 %v2637_v22, %v1034_v42  ;;  %v1152_v27 = vadd.f32 %v1151_v36, %v2646_v34  ;;  %v1161_v28 = vpop.f32.mrf.mxu3  ;;  %v1157_v34 = vadd.f32 %v1156_v10, %v2662_v56 }
 0x113   : > { %v1084_v46 = vadd.f32 %v1083_v43, %v1035_v45  ;;  %1229 = vmatmul.bf16.gmra.mxu0 %v1783_v39 }
 0x114   : > { %1278 = vmatmul.bf16.gmra.mxu1 %v1787_v40 }
 0x115   : > { %2022 = vmatmul.msk.bf16.gmra.mxu2 %vm970_vm0, %v1791_v44 }
 0x118   : > { %v1132_v49 = vpop.f32.mrf.mxu2  ;;  %v1036_v51 = vpop.f32.mrf.mxu0 }
 0x119   : > { %v2742_v50 = vadd.f32 %v1132_v49, %v1084_v46  ;;  %v1085_v52 = vpop.f32.mrf.mxu1  ;;  %v1037_v55 = vadd.f32 %v2637_v22, %v1036_v51  ;;  %v1163_v46 = vpop.f32.mrf.mxu3 }
 0x11b   : > { %v1086_v57 = vadd.f32 %v1085_v52, %v1037_v55 }
 0x120   : > { %v1134_v1 = vpop.f32.mrf.mxu2  ;;  %v1039_v5 = vpop.f32.mrf.mxu0 }
 0x121   : > { %v2751_v4 = vadd.f32 %v1134_v1, %v1086_v57  ;;  %v1088_v7 = vpop.f32.mrf.mxu1  ;;  %v1040_v9 = vadd.f32 %v2637_v22, %v1039_v5  ;;  %v1166_v58 = vpop.f32.mrf.mxu3 }
 0x123   : > { %v1089_v11 = vadd.f32 %v1088_v7, %v1040_v9  ;;  %1234 = vmatmul.bf16.gmra.mxu0 %v1811_v2  ;;  %v1164_v9 = vadd.f32 %v1163_v46, %v2687_v29 }
 0x124   : > { %1283 = vmatmul.bf16.gmra.mxu1 %v1815_v3 }
 0x125   : > { %2023 = vmatmul.msk.bf16.gmra.mxu2 %vm970_vm0, %v1819_v8  ;;  %v1162_v8 = vadd.f32 %v1161_v28, %v2678_v14  ;;  %v1167_v14 = vadd.f32 %v1166_v58, %v2694_v38 }
 0x128   : > { %v1137_v12 = vpop.f32.mrf.mxu2  ;;  %v1041_v16 = vpop.f32.mrf.mxu0 }
 0x129   : > { %v2755_v15 = vadd.f32 %v1137_v12, %v1089_v11  ;;  %v1090_v17 = vpop.f32.mrf.mxu1  ;;  %v1042_v18 = vadd.f32 %v2637_v22, %v1041_v16  ;;  %v1168_v56 = vpop.f32.mrf.mxu3 }
 0x12a   : > { %v1169_v29 = vadd.f32 %v1168_v56, %v2703_v53 }
 0x12b   : > { %v1091_v19 = vadd.f32 %v1090_v17, %v1042_v18 }
 0x130   : > { %v1139_v21 = vpop.f32.mrf.mxu2  ;;  %v1200_v25 = vpop.f32.mrf.mxu0 }
 0x131   : > { %v2758_v24 = vadd.f32 %v1139_v21, %v1091_v19  ;;  %v1249_v26 = vpop.f32.mrf.mxu1  ;;  %v1201_v32 = vadd.f32 %v1200_v25, %v1152_v27  ;;  %v1171_v20 = vpop.f32.mrf.mxu3 }
 0x133   : > { %v1250_v39 = vadd.f32 %v1249_v26, %v1201_v32 }
 0x138   : > { %v1298_v30 = vpop.f32.mrf.mxu2  ;;  %v1202_v33 = vpop.f32.mrf.mxu0 }
 0x139   : > { %v1251_v35 = vpop.f32.mrf.mxu1  ;;  %v1203_v37 = vadd.f32 %v1202_v33, %v1154_v31  ;;  %v1299_v40 = vadd.f32 %v1298_v30, %v1250_v39  ;;  %v1173_v39 = vpop.f32.mrf.mxu3 }
 0x13b   : > { %v1252_v22 = vadd.f32 %v1251_v35, %v1203_v37  ;;  %v1338_v47 = vmax.f32 %v1299_v40, 0.0 }
 0x140   : > { %v1300_v42 = vpop.f32.mrf.mxu2  ;;  %v1205_v44 = vpop.f32.mrf.mxu0 }
 0x141   : > { %v1301_v43 = vadd.f32 %v1300_v42, %v1252_v22  ;;  %v1254_v45 = vpop.f32.mrf.mxu1  ;;  %v1206_v52 = vadd.f32 %v1205_v44, %v1157_v34  ;;  %v1176_v34 = vpop.f32.mrf.mxu3 }
 0x143   : > { %v1339_v49 = vmax.f32 %v1301_v43, 0.0  ;;  %v1255_v59 = vadd.f32 %v1254_v45, %v1206_v52 }
 0x145   : > { %v1354_v51 = vpack.c.bf16 %v1339_v49, %v1338_v47 }
 0x147   : > { %1438 = vmatmul.bf16.vlgmr.msrb.gmra.mxu3 %v1354_v51 }
 0x148   : > { %v1303_v36 = vpop.f32.mrf.mxu2  ;;  %v1207_v54 = vpop.f32.mrf.mxu0 }
 0x149   : > { %v1256_v55 = vpop.f32.mrf.mxu1  ;;  %v1208_v57 = vadd.f32 %v1207_v54, %v1159_v48  ;;  %v1304_v60 = vadd.f32 %v1303_v36, %v1255_v59  ;;  %v1172_v36 = vadd.f32 %v1171_v20, %v2710_v62  ;;  %v1174_v48 = vadd.f32 %v1173_v39, %v2719_v13  ;;  %v1178_v59 = vpop.f32.mrf.mxu3 }
 0x14a   : > { %v1177_v62 = vadd.f32 %v1176_v34, %v2726_v23 }
 0x14b   : > { %v1257_v61 = vadd.f32 %v1256_v55, %v1208_v57  ;;  %v1340_v3 = vmax.f32 %v1304_v60, 0.0 }
 0x150   : > { %v1305_v63 = vpop.f32.mrf.mxu2  ;;  %v1210_v1 = vpop.f32.mrf.mxu0 }
 0x151   : > { %v1306_v0 = vadd.f32 %v1305_v63, %v1257_v61  ;;  %v1259_v2 = vpop.f32.mrf.mxu1  ;;  %v1211_v10 = vadd.f32 %v1210_v1, %v1162_v8  ;;  %v1181_v56 = vpop.f32.mrf.mxu3  ;;  %v1179_v8 = vadd.f32 %v1178_v59, %v2735_v41 }
 0x153   : > { %v1341_v5 = vmax.f32 %v1306_v0, 0.0  ;;  %v1260_v17 = vadd.f32 %v1259_v2, %v1211_v10 }
 0x155   : > { %v1355_v7 = vpack.c.bf16 %v1341_v5, %v1340_v3 }
 0x157   : > { %1443 = vmatmul.bf16.gmra.mxu3 %v1355_v7 }
 0x158   : > { %v1308_v6 = vpop.f32.mrf.mxu2  ;;  %v1212_v11 = vpop.f32.mrf.mxu0 }
 0x159   : > { %v1261_v12 = vpop.f32.mrf.mxu1  ;;  %v1213_v16 = vadd.f32 %v1212_v11, %v1164_v9  ;;  %v1309_v18 = vadd.f32 %v1308_v6, %v1260_v17 }
 0x15b   : > { %v1262_v19 = vadd.f32 %v1261_v12, %v1213_v16  ;;  %v1342_v30 = vmax.f32 %v1309_v18, 0.0 }
 0x160   : > { %v1310_v21 = vpop.f32.mrf.mxu2  ;;  %v1215_v26 = vpop.f32.mrf.mxu0 }
 0x161   : > { %v1311_v25 = vadd.f32 %v1310_v21, %v1262_v19  ;;  %v1264_v27 = vpop.f32.mrf.mxu1  ;;  %v1216_v33 = vadd.f32 %v1215_v26, %v1167_v14 }
 0x163   : > { %v1343_v31 = vmax.f32 %v1311_v25, 0.0  ;;  %v1265_v22 = vadd.f32 %v1264_v27, %v1216_v33  ;;  %v1183_v25 = vpop.f32.mrf.mxu3 }
 0x164   : > { %v1184_v41 = vadd.f32 %v1183_v25, %v2751_v4 }
 0x165   : > { %v1356_v32 = vpack.c.bf16 %v1343_v31, %v1342_v30  ;;  %v1182_v30 = vadd.f32 %v1181_v56, %v2742_v50 }
 0x167   : > { %1448 = vmatmul.bf16.gmra.mxu3 %v1356_v32 }
 0x168   : > { %v1313_v28 = vpop.f32.mrf.mxu2  ;;  %v1217_v35 = vpop.f32.mrf.mxu0 }
 0x169   : > { %v1266_v37 = vpop.f32.mrf.mxu1  ;;  %v1218_v40 = vadd.f32 %v1217_v35, %v1169_v29  ;;  %v1314_v42 = vadd.f32 %v1313_v28, %v1265_v22 }
 0x16b   : > { %v1267_v43 = vadd.f32 %v1266_v37, %v1218_v40  ;;  %v1344_v49 = vmax.f32 %v1314_v42, 0.0  ;;  %v1186_v33 = vpop.f32.mrf.mxu3 }
 0x170   : > { %v1315_v44 = vpop.f32.mrf.mxu2  ;;  %v1220_v46 = vpop.f32.mrf.mxu0 }
 0x171   : > { %v1316_v45 = vadd.f32 %v1315_v44, %v1267_v43  ;;  %v1269_v47 = vpop.f32.mrf.mxu1  ;;  %v1221_v52 = vadd.f32 %v1220_v46, %v1172_v36 }
 0x173   : > { %v1345_v51 = vmax.f32 %v1316_v45, 0.0  ;;  %v1270_v58 = vadd.f32 %v1269_v47, %v1221_v52  ;;  %v1188_v50 = vpop.f32.mrf.mxu3  ;;  %v1187_v47 = vadd.f32 %v1186_v33, %v2755_v15 }
 0x175   : > { %v1357_v38 = vpack.c.bf16 %v1345_v51, %v1344_v49  ;;  %v1189_v49 = vadd.f32 %v1188_v50, %v2758_v24  ;;  %v2265_v24 = vld [vmem:[%s2830_s4] ss:$0 sm:$0xff] }
 0x177   : > { %1453 = vmatmul.bf16.gmra.mxu3 %v1357_v38 }
 0x178   : > { %v1318_v53 = vpop.f32.mrf.mxu2  ;;  %v1222_v54 = vpop.f32.mrf.mxu0 }
 0x179   : > { %v1271_v55 = vpop.f32.mrf.mxu1  ;;  %v1223_v57 = vadd.f32 %v1222_v54, %v1174_v48  ;;  %v1319_v60 = vadd.f32 %v1318_v53, %v1270_v58 }
 0x17b   : > { %v1272_v61 = vadd.f32 %v1271_v55, %v1223_v57  ;;  %v1346_v3 = vmax.f32 %v1319_v60, 0.0 }
 0x180   : > { %v1320_v63 = vpop.f32.mrf.mxu2  ;;  %v1225_v1 = vpop.f32.mrf.mxu0 }
 0x181   : > { %v1321_v0 = vadd.f32 %v1320_v63, %v1272_v61  ;;  %v1274_v2 = vpop.f32.mrf.mxu1  ;;  %v1226_v6 = vadd.f32 %v1225_v1, %v1177_v62 }
 0x183   : > { %v1347_v5 = vmax.f32 %v1321_v0, 0.0  ;;  %v1275_v12 = vadd.f32 %v1274_v2, %v1226_v6 }
 0x185   : > { %v1358_v7 = vpack.c.bf16 %v1347_v5, %v1346_v3 }
 0x187   : > { %1458 = vmatmul.bf16.gmra.mxu3 %v1358_v7 }
 0x188   : > { %v1323_v13 = vpop.f32.mrf.mxu2  ;;  %v1227_v9 = vpop.f32.mrf.mxu0 }
 0x189   : > { %v1276_v10 = vpop.f32.mrf.mxu1  ;;  %v1228_v11 = vadd.f32 %v1227_v9, %v1179_v8  ;;  %v1324_v16 = vadd.f32 %v1323_v13, %v1275_v12 }
 0x18b   : > { %v1277_v17 = vadd.f32 %v1276_v10, %v1228_v11  ;;  %v1348_v26 = vmax.f32 %v1324_v16, 0.0 }
 0x190   : > { %v1325_v18 = vpop.f32.mrf.mxu2  ;;  %v1230_v20 = vpop.f32.mrf.mxu0 }
 0x191   : > { %v1326_v19 = vadd.f32 %v1325_v18, %v1277_v17  ;;  %v1279_v21 = vpop.f32.mrf.mxu1  ;;  %v1231_v32 = vadd.f32 %v1230_v20, %v1182_v30 }
 0x193   : > { %v1349_v27 = vmax.f32 %v1326_v19, 0.0  ;;  %v1280_v35 = vadd.f32 %v1279_v21, %v1231_v32 }
 0x195   : > { %v1359_v23 = vpack.c.bf16 %v1349_v27, %v1348_v26 }
 0x197   : > { %1463 = vmatmul.bf16.gmra.mxu3 %v1359_v23 }
 0x198   : > { %v1328_v31 = vpop.f32.mrf.mxu2  ;;  %v1232_v14 = vpop.f32.mrf.mxu0 }
 0x199   : > { %v1281_v28 = vpop.f32.mrf.mxu1  ;;  %v1233_v29 = vadd.f32 %v1232_v14, %v1184_v41  ;;  %v1329_v37 = vadd.f32 %v1328_v31, %v1280_v35 }
 0x19b   : > { %v1282_v39 = vadd.f32 %v1281_v28, %v1233_v29  ;;  %v1350_v43 = vmax.f32 %v1329_v37, 0.0 }
 0x1a0   : > { %v1330_v40 = vpop.f32.mrf.mxu2  ;;  %v1235_v42 = vpop.f32.mrf.mxu0 }
 0x1a1   : > { %v1331_v22 = vadd.f32 %v1330_v40, %v1282_v39  ;;  %v1284_v45 = vpop.f32.mrf.mxu1  ;;  %v1236_v51 = vadd.f32 %v1235_v42, %v1187_v47 }
 0x1a3   : > { %v1351_v44 = vmax.f32 %v1331_v22, 0.0  ;;  %v1285_v36 = vadd.f32 %v1284_v45, %v1236_v51 }
 0x1a5   : > { %v1360_v46 = vpack.c.bf16 %v1351_v44, %v1350_v43 }
 0x1a7   : > { %1468 = vmatmul.bf16.gmra.mxu3 %v1360_v46 }
 0x1a8   : > { %v1333_v4 = vpop.f32.mrf.mxu2  ;;  %v1237_v34 = vpop.f32.mrf.mxu0 }
 0x1a9   : > { %v1238_v38 = vadd.f32 %v1237_v34, %v1189_v49  ;;  %v1286_v53 = vpop.f32.mrf.mxu1  ;;  %v1334_v48 = vadd.f32 %v1333_v4, %v1285_v36 }
 0x1ab   : > { %v1287_v52 = vadd.f32 %v1286_v53, %v1238_v38  ;;  %v1352_v57 = vmax.f32 %v1334_v48, 0.0 }
 0x1b0   : > { %v1335_v54 = vpop.f32.mrf.mxu2 }
 0x1b1   : > { %v1336_v55 = vadd.f32 %v1335_v54, %v1287_v52 }
 0x1b3   : > { %v1353_v58 = vmax.f32 %v1336_v55, 0.0 }
 0x1b5   : > { %v1361_v59 = vpack.c.bf16 %v1353_v58, %v1352_v57 }
 0x1b7   : > { %1473 = vmatmul.bf16.gmra.mxu3 %v1361_v59 }
 0x1ca   : > { %v1439_v15 = vpop.f32.mrf.mxu3 }
 0x1cb   : > { %v1440_v61 = vadd.f32 %v2265_v24, %v1439_v15 }
 0x1d2   : > { %v1441_v60 = vpop.f32.mrf.mxu3 }
 0x1d3   : > { %v1442_v63 = vadd.f32 %v2265_v24, %v1441_v60 }
 0x1d5   : > { %v2178_v0 = vpack.c.bf16 %v1442_v63, %v1440_v61 }
 0x1d7   : > { %2179 = vst [vmem:[%s2782_s6] sm:$0xff] %v2178_v0  }
 0x1da   : > { %v1444_v1 = vpop.f32.mrf.mxu3 }
 0x1db   : > { %v1445_v3 = vadd.f32 %v2265_v24, %v1444_v1 }
 0x1e2   : > { %v1446_v2 = vpop.f32.mrf.mxu3 }
 0x1e3   : > { %v1447_v5 = vadd.f32 %v2265_v24, %v1446_v2 }
 0x1e5   : > { %v2183_v7 = vpack.c.bf16 %v1447_v5, %v1445_v3 }
 0x1e7   : > { %2215 = vst [vmem:[%s2782_s6 + $0x8] sm:$0xff] %v2183_v7  }
 0x1ea   : > { %v1449_v62 = vpop.f32.mrf.mxu3 }
 0x1eb   : > { %v1450_v13 = vadd.f32 %v2265_v24, %v1449_v62 }
 0x1f2   : > { %v1451_v56 = vpop.f32.mrf.mxu3 }
 0x1f3   : > { %v1452_v8 = vadd.f32 %v2265_v24, %v1451_v56 }
 0x1f5   : > { %v2188_v6 = vpack.c.bf16 %v1452_v8, %v1450_v13 }
 0x1f7   : > { %2216 = vst [vmem:[%s2782_s6 + $0x10] sm:$0xff] %v2188_v6  }
 0x1fa   : > { %v1454_v9 = vpop.f32.mrf.mxu3 }
 0x1fb   : > { %v1455_v11 = vadd.f32 %v2265_v24, %v1454_v9 }
 0x202   : > { %v1456_v10 = vpop.f32.mrf.mxu3 }
 0x203   : > { %v1457_v12 = vadd.f32 %v2265_v24, %v1456_v10 }
 0x205   : > { %v2193_v16 = vpack.c.bf16 %v1457_v12, %v1455_v11 }
 0x207   : > { %2217 = vst [vmem:[%s2782_s6 + $0x18] sm:$0xff] %v2193_v16  }
 0x20a   : > { %v1459_v17 = vpop.f32.mrf.mxu3 }
 0x20b   : > { %v1460_v19 = vadd.f32 %v2265_v24, %v1459_v17 }
 0x212   : > { %v1461_v18 = vpop.f32.mrf.mxu3 }
 0x213   : > { %v1462_v20 = vadd.f32 %v2265_v24, %v1461_v18 }
 0x215   : > { %v2198_v21 = vpack.c.bf16 %v1462_v20, %v1460_v19 }
 0x217   : > { %2218 = vst [vmem:[%s2782_s6 + $0x20] sm:$0xff] %v2198_v21  }
 0x21a   : > { %v1464_v25 = vpop.f32.mrf.mxu3 }
 0x21b   : > { %v1465_v27 = vadd.f32 %v2265_v24, %v1464_v25 }
 0x222   : > { %v1466_v26 = vpop.f32.mrf.mxu3 }
 0x223   : > { %v1467_v23 = vadd.f32 %v2265_v24, %v1466_v26 }
 0x225   : > { %v2203_v30 = vpack.c.bf16 %v1467_v23, %v1465_v27 }
 0x227   : > { %2219 = vst [vmem:[%s2782_s6 + $0x28] sm:$0xff] %v2203_v30  }
 0x22a   : > { %v1469_v31 = vpop.f32.mrf.mxu3 }
 0x22b   : > { %v1470_v32 = vadd.f32 %v2265_v24, %v1469_v31 }
 0x232   : > { %v1471_v41 = vpop.f32.mrf.mxu3 }
 0x233   : > { %v1472_v14 = vadd.f32 %v2265_v24, %v1471_v41 }
 0x235   : > { %v2208_v28 = vpack.c.bf16 %v1472_v14, %v1470_v32 }
 0x237   : > { %2220 = vst [vmem:[%s2782_s6 + $0x30] sm:$0xff] %v2208_v28  }
 0x23a   : > { %v1474_v29 = vpop.f32.mrf.mxu3 }
 0x23b   : > { %v1475_v35 = vadd.f32 %v2265_v24, %v1474_v29 }
 0x242   : > { %v1476_v33 = vpop.f32.mrf.mxu3 }
 0x243   : > { %v1477_v37 = vadd.f32 %v2265_v24, %v1476_v33 }
 0x245   : > { %v2213_v39 = vpack.c.bf16 %v1477_v37, %v1475_v35 }
 0x247   : > { %2221 = vst [vmem:[%s2782_s6 + $0x38] sm:$0xff] %v2213_v39  }
 0x248   : > { %2293 = shalt.err (!%p2290_p3)
}
 0x249   : > { %s2330_s14 = smov 64   ;;  %s2331_s30 = smov 4  }
 0x24a   : > { %2223 = dma.vmem_to_hbm [thread:$0]  (%p2400_p5), %s1525_s11, 1024, %s1527_s13, %s1512_s12, %s2330_s14, %s2330_s14, %s2331_s30  }
 0x24b PF: > { %p2229_p4 = scmp.ge.s32.totalorder %s2328_s21, 2  ;;  %s1541_s6 = sand.u32 1, %s2316_s18  }
 0x24c   : > { %s1542_s7 = scalar_lea.sflag [#allocation3], %s1541_s6 }
 0x24d   : > { %p2226_p7 = pnand %p2229_p4, %p2404_p6 }
 0x24f   : > { %p2227_p8 = pneg %p2226_p7 }
 0x251   : > { %2311 = dma.done.wait (%p2227_p8), %s1542_s7, 1024  }
 0x252   : > { %2313 = vsyncadd (%p2227_p8), %s1542_s7, 4294966272  ;;  %p15_p9 = scmp.ge.s32.totalorder %s2387_s24, 4   ;;  %s2834_s18 = smov %s2320_s19 }
 0x253   : > { %s2835_s19 = smov %s2324_s20  ;;  %s2836_s20 = smov %s2398_s27 }
 0x254   : > { %s2837_s21 = smov %s2387_s24  ;;  %17 = sbr.rel (!%p15_p9) target bundleno = 3 (0x3), region = 75 }
 0x259   :  { %1548 = vsyncpa [#allocation3], 1 }
 0x25a   :  { %1550 = vsyncpa [#allocation3 + $0x1], 1 }

</bundles_post_ra>
